<compile_context>
chip_gen: v6e
topology: v6e:2x2x1
jax: 0.10.0
libtpu: 0.0.40
codegen_flags: <defaults>
</compile_context>

<pallas_src>
import jax
import jax.numpy as jnp
from jax.experimental import pallas as pl
from jax.experimental.pallas import tpu as pltpu

C_COND = 32
C_FEAT = 64


def sft_kernel(cond_ref, feat_ref, w0_ref, b0_ref, w1_ref, b1_ref, out_ref):
    # cond_ref: (32, tpix)   feat_ref/out_ref: (64, tpix)
    # w0_ref: (64, 32)  b0_ref: (64, 1)  w1_ref: (128, 64)  b1_ref: (128, 1)
    cond = cond_ref[...]

    # fused stage 1: [hs; hh] = leaky_relu(W0 @ cond + b0, 0.1)     -> (64, tpix)
    h = jnp.dot(w0_ref[...], cond, preferred_element_type=jnp.float32) + b0_ref[...]
    h = jnp.where(h >= 0.0, h, 0.1 * h)

    # fused stage 2: [scale; shift] = W1 @ h + b1                   -> (128, tpix)
    y = jnp.dot(w1_ref[...], h, preferred_element_type=jnp.float32) + b1_ref[...]
    scale = y[:C_FEAT, :]
    shift = y[C_FEAT:, :]

    out_ref[...] = (feat_ref[...] * (scale + 1.0) + shift).astype(out_ref.dtype)


def _choose_tpix(hw, tpix_max):
    """Largest legal lane-tile: a multiple of 128 dividing hw (capped), else hw."""
    if hw <= tpix_max:
        return hw                      # full-extent block is always legal
    t = (tpix_max // 128) * 128
    while t >= 128:
        if hw % t == 0:
            return t
        t -= 128
    return hw                          # ragged fallback: one full-width block


def sft_layer(feat_nchw, cond_nchw, packed_params, *, tpix_max=2048):
    """feat_nchw: (N, 64, H, W), cond_nchw: (N, 32, H, W) -> (N, 64, H, W)."""
    N, _, H, W = feat_nchw.shape
    HW = H * W

    # Free reshapes (no transpose): NCHW -> (N, C, HW), pixels on the lane axis.
    feat = feat_nchw.reshape(N, C_FEAT, HW)
    cond = cond_nchw.reshape(N, C_COND, HW)

    w0, b0, w1, b1 = packed_params
    tpix = _choose_tpix(HW, tpix_max)
    grid = (N, HW // tpix)

    row_spec = lambda c: pl.BlockSpec((pl.Squeezed(), c, tpix),
                                      lambda n, p: (n, 0, p))
    full_spec = lambda r, c: pl.BlockSpec((r, c), lambda n, p: (0, 0))

    out = pl.pallas_call(
        sft_kernel,
        out_shape=jax.ShapeDtypeStruct((N, C_FEAT, HW), feat.dtype),
        grid_spec=pltpu.PrefetchScalarGridSpec(
            num_scalar_prefetch=0,
            grid=grid,
            in_specs=[
                row_spec(C_COND),                       # cond (32, tpix)
                row_spec(C_FEAT),                       # feat (64, tpix)
                full_spec(2 * C_COND, C_COND),          # W0   (64, 32)
                full_spec(2 * C_COND, 1),               # b0   (64, 1)
                full_spec(2 * C_FEAT, 2 * C_COND),      # W1   (128, 64)
                full_spec(2 * C_FEAT, 1),               # b1   (128, 1)
            ],
            out_specs=row_spec(C_FEAT),                 # out  (64, tpix)
        ),
        compiler_params=pltpu.CompilerParams(
            dimension_semantics=("parallel", "parallel")),
    )(cond, feat, w0, b0, w1, b1)

    return out.reshape(N, C_FEAT, H, W)


def init_params(key):
    """Raw per-conv params in PyTorch layout: weights (Cout, Cin), biases (Cout,)."""
    ks = jax.random.split(key, 8)

    def w(k, cout, cin):
        bound = 1.0 / jnp.sqrt(cin)
        return jax.random.uniform(k, (cout, cin), jnp.float32, -bound, bound)

    def b(k, cout, cin):
        bound = 1.0 / jnp.sqrt(cin)
        return jax.random.uniform(k, (cout,), jnp.float32, -bound, bound)

    ws0 = w(ks[0], C_COND, C_COND); bs0 = b(ks[1], C_COND, C_COND)
    ws1 = w(ks[2], C_FEAT, C_COND); bs1 = b(ks[3], C_FEAT, C_COND)
    wh0 = w(ks[4], C_COND, C_COND); bh0 = b(ks[5], C_COND, C_COND)
    wh1 = w(ks[6], C_FEAT, C_COND); bh1 = b(ks[7], C_FEAT, C_COND)
    return (ws0, bs0, ws1, bs1, wh0, bh0, wh1, bh1)


def pack_params(raw_params):
    """Fuse scale/shift branch weights for the 2-matmul kernel."""
    ws0, bs0, ws1, bs1, wh0, bh0, wh1, bh1 = raw_params
    w0 = jnp.concatenate([ws0, wh0], axis=0)                         # (64, 32)
    b0 = jnp.concatenate([bs0, bh0], axis=0)[:, None]                # (64, 1)
    zero = jnp.zeros((C_FEAT, C_COND), jnp.float32)
    w1 = jnp.concatenate(
        [jnp.concatenate([ws1, zero], axis=1),
         jnp.concatenate([zero, wh1], axis=1)], axis=0)              # (128, 64)
    b1 = jnp.concatenate([bs1, bh1], axis=0)[:, None]                # (128, 1)
    return (w0, b0, w1, b1)


def sft_layer_ref(feat_nchw, cond_nchw, raw_params):
    """Pure-JAX reference mirroring the PyTorch forward (NCHW throughout)."""
    ws0, bs0, ws1, bs1, wh0, bh0, wh1, bh1 = raw_params
    N, _, H, W = feat_nchw.shape
    cond = cond_nchw.reshape(N, C_COND, H * W)
    feat = feat_nchw.reshape(N, C_FEAT, H * W)
    lrelu = lambda v: jnp.where(v >= 0, v, 0.1 * v)
    hs = lrelu(jnp.einsum("oc,ncp->nop", ws0, cond) + bs0[None, :, None])
    scale = jnp.einsum("oc,ncp->nop", ws1, hs) + bs1[None, :, None]
    hh = lrelu(jnp.einsum("oc,ncp->nop", wh0, cond) + bh0[None, :, None])
    shift = jnp.einsum("oc,ncp->nop", wh1, hh) + bh1[None, :, None]
    out = feat * (scale + 1.0) + shift
    return out.reshape(N, C_FEAT, H, W)


if __name__ == "__main__":
    key = jax.random.PRNGKey(0)
    k_feat, k_cond, k_param = jax.random.split(key, 3)

    N, H, W = 2, 16, 16
    feat = jax.random.normal(k_feat, (N, C_FEAT, H, W), jnp.float32)   # x[0]
    cond = jax.random.normal(k_cond, (N, C_COND, H, W), jnp.float32)   # x[1]

    raw_params = init_params(k_param)
    packed = pack_params(raw_params)

    out = sft_layer(feat, cond, packed)
    out = jax.block_until_ready(out)

    ref = sft_layer_ref(feat, cond, raw_params)
    assert out.shape == (N, C_FEAT, H, W)
    assert jnp.allclose(out, ref, atol=1e-5, rtol=1e-5)

    print("KERNEL_OK")
</pallas_src>

<mosaic_0001>
module attributes {stable_mosaic.version = 11 : i64} {
  func.func @sft_kernel(%arg0: i32, %arg1: i32, %arg2: memref<1x32x256xf32, #tpu.memory_space<vmem>>, %arg3: memref<1x64x256xf32, #tpu.memory_space<vmem>>, %arg4: memref<64x32xf32, #tpu.memory_space<vmem>>, %arg5: memref<64x1xf32, #tpu.memory_space<vmem>>, %arg6: memref<128x64xf32, #tpu.memory_space<vmem>>, %arg7: memref<128x1xf32, #tpu.memory_space<vmem>>, %arg8: memref<1x64x256xf32, #tpu.memory_space<vmem>>) attributes {dimension_semantics = [#tpu.dimension_semantics<parallel>, #tpu.dimension_semantics<parallel>], iteration_bounds = array<i64: 2, 1>, scalar_prefetch = 0 : i64, scratch_operands = 0 : i64, tpu.core_type = #tpu.core_type<tc>, window_params = [{transform_indices = @transform_0, window_bounds = array<i64: 1, 32, 256>}, {transform_indices = @transform_1, window_bounds = array<i64: 1, 64, 256>}, {pipeline_mode = #tpu.pipeline_mode<synchronous>, transform_indices = @transform_2, window_bounds = array<i64: 64, 32>}, {pipeline_mode = #tpu.pipeline_mode<synchronous>, transform_indices = @transform_3, window_bounds = array<i64: 64, 1>}, {pipeline_mode = #tpu.pipeline_mode<synchronous>, transform_indices = @transform_4, window_bounds = array<i64: 128, 64>}, {pipeline_mode = #tpu.pipeline_mode<synchronous>, transform_indices = @transform_5, window_bounds = array<i64: 128, 1>}, {transform_indices = @transform_6, window_bounds = array<i64: 1, 64, 256>}]} {
    %c0 = arith.constant 0 : index
    %c0_0 = arith.constant 0 : index
    %c0_1 = arith.constant 0 : index
    %0 = vector.load %arg2[%c0, %c0_0, %c0_1] : memref<1x32x256xf32, #tpu.memory_space<vmem>>, vector<1x32x256xf32>
    %1 = vector.shape_cast %0 : vector<1x32x256xf32> to vector<32x256xf32>
    %c0_2 = arith.constant 0 : index
    %c0_3 = arith.constant 0 : index
    %2 = vector.load %arg4[%c0_2, %c0_3] : memref<64x32xf32, #tpu.memory_space<vmem>>, vector<64x32xf32>
    %cst = arith.constant dense<0.000000e+00> : vector<64x256xf32>
    %3 = tpu.matmul %2, %1, %cst {dimension_numbers = #tpu.dot_dimension_numbers<[1], [0], [0], [1], [0, 0, 1, 1], [], []>} : vector<64x32xf32>, vector<32x256xf32>, vector<64x256xf32> -> vector<64x256xf32>
    %c0_4 = arith.constant 0 : index
    %c0_5 = arith.constant 0 : index
    %4 = vector.load %arg5[%c0_4, %c0_5] : memref<64x1xf32, #tpu.memory_space<vmem>>, vector<64x1xf32>
    %5 = vector.broadcast %4 : vector<64x1xf32> to vector<64x256xf32>
    %6 = arith.addf %3, %5 : vector<64x256xf32>
    %cst_6 = arith.constant 0.000000e+00 : f32
    %7 = vector.broadcast %cst_6 : f32 to vector<64x256xf32>
    %8 = arith.cmpf oge, %6, %7 : vector<64x256xf32>
    %cst_7 = arith.constant 1.000000e-01 : f32
    %9 = vector.broadcast %cst_7 : f32 to vector<64x256xf32>
    %10 = arith.mulf %9, %6 : vector<64x256xf32>
    %11 = arith.select %8, %6, %10 : vector<64x256xi1>, vector<64x256xf32>
    %c0_8 = arith.constant 0 : index
    %c0_9 = arith.constant 0 : index
    %12 = vector.load %arg6[%c0_8, %c0_9] : memref<128x64xf32, #tpu.memory_space<vmem>>, vector<128x64xf32>
    %cst_10 = arith.constant dense<0.000000e+00> : vector<128x256xf32>
    %13 = tpu.matmul %12, %11, %cst_10 {dimension_numbers = #tpu.dot_dimension_numbers<[1], [0], [0], [1], [0, 0, 1, 1], [], []>} : vector<128x64xf32>, vector<64x256xf32>, vector<128x256xf32> -> vector<128x256xf32>
    %c0_11 = arith.constant 0 : index
    %c0_12 = arith.constant 0 : index
    %14 = vector.load %arg7[%c0_11, %c0_12] : memref<128x1xf32, #tpu.memory_space<vmem>>, vector<128x1xf32>
    %15 = vector.broadcast %14 : vector<128x1xf32> to vector<128x256xf32>
    %16 = arith.addf %13, %15 : vector<128x256xf32>
    %17 = vector.extract_strided_slice %16 {offsets = [0, 0], sizes = [64, 256], strides = [1, 1]} : vector<128x256xf32> to vector<64x256xf32>
    %18 = vector.extract_strided_slice %16 {offsets = [64, 0], sizes = [64, 256], strides = [1, 1]} : vector<128x256xf32> to vector<64x256xf32>
    %c0_13 = arith.constant 0 : index
    %c0_14 = arith.constant 0 : index
    %c0_15 = arith.constant 0 : index
    %19 = vector.load %arg3[%c0_13, %c0_14, %c0_15] : memref<1x64x256xf32, #tpu.memory_space<vmem>>, vector<1x64x256xf32>
    %20 = vector.shape_cast %19 : vector<1x64x256xf32> to vector<64x256xf32>
    %cst_16 = arith.constant 1.000000e+00 : f32
    %21 = vector.broadcast %cst_16 : f32 to vector<64x256xf32>
    %22 = arith.addf %17, %21 : vector<64x256xf32>
    %23 = arith.mulf %20, %22 : vector<64x256xf32>
    %24 = arith.addf %23, %18 : vector<64x256xf32>
    %c0_17 = arith.constant 0 : index
    %c0_18 = arith.constant 0 : index
    %c0_19 = arith.constant 0 : index
    %25 = vector.load %arg8[%c0_17, %c0_18, %c0_19] : memref<1x64x256xf32, #tpu.memory_space<vmem>>, vector<1x64x256xf32>
    %26 = vector.shape_cast %25 : vector<1x64x256xf32> to vector<64x256xf32>
    %27 = vector.shape_cast %24 : vector<64x256xf32> to vector<1x64x256xf32>
    tpu.vector_store %arg8[%c0_17, %c0_18, %c0_19], %27 {strides = array<i32>} : memref<1x64x256xf32, #tpu.memory_space<vmem>>, vector<1x64x256xf32>,
    return
  }
  func.func @transform_0(%arg0: i32, %arg1: i32) -> (i32, i32, i32) {
    %c0_i32 = arith.constant 0 : i32
    %c0_i32_0 = arith.constant 0 : i32
    return %arg0, %c0_i32, %arg1 : i32, i32, i32
  }
  func.func @transform_1(%arg0: i32, %arg1: i32) -> (i32, i32, i32) {
    %c0_i32 = arith.constant 0 : i32
    %c0_i32_0 = arith.constant 0 : i32
    return %arg0, %c0_i32, %arg1 : i32, i32, i32
  }
  func.func @transform_2(%arg0: i32, %arg1: i32) -> (i32, i32) {
    %c0_i32 = arith.constant 0 : i32
    %c0_i32_0 = arith.constant 0 : i32
    %c0_i32_1 = arith.constant 0 : i32
    return %c0_i32, %c0_i32_0 : i32, i32
  }
  func.func @transform_3(%arg0: i32, %arg1: i32) -> (i32, i32) {
    %c0_i32 = arith.constant 0 : i32
    %c0_i32_0 = arith.constant 0 : i32
    %c0_i32_1 = arith.constant 0 : i32
    return %c0_i32, %c0_i32_0 : i32, i32
  }
  func.func @transform_4(%arg0: i32, %arg1: i32) -> (i32, i32) {
    %c0_i32 = arith.constant 0 : i32
    %c0_i32_0 = arith.constant 0 : i32
    %c0_i32_1 = arith.constant 0 : i32
    return %c0_i32, %c0_i32_0 : i32, i32
  }
  func.func @transform_5(%arg0: i32, %arg1: i32) -> (i32, i32) {
    %c0_i32 = arith.constant 0 : i32
    %c0_i32_0 = arith.constant 0 : i32
    %c0_i32_1 = arith.constant 0 : i32
    return %c0_i32, %c0_i32_0 : i32, i32
  }
  func.func @transform_6(%arg0: i32, %arg1: i32) -> (i32, i32, i32) {
    %c0_i32 = arith.constant 0 : i32
    %c0_i32_0 = arith.constant 0 : i32
    return %arg0, %c0_i32, %arg1 : i32, i32, i32
  }
}

</mosaic_0001>

<bundles_post_ra>
// kernel: tpu_custom_call.1
= control target key start
LH: loop header
LB: loop body
LE: loop exit
PB: predicated region body
PF: predicated region fallthrough
CT: control target
= control target key end

     0   :  { %11 = vsyncpa [#allocation3], 0  ;;  %s1725_s0 = inlined_call_operand.vmem [shape: f32[2,32,256], index: 0, kind: input, shape index: {}]   ;;  %s1726_s1 = inlined_call_operand.vmem [shape: f32[2,64,256], index: 1, kind: input, shape index: {}]   ;;  %s1727_s2 = inlined_call_operand.vmem [shape: f32[64,32], index: 2, kind: input, shape index: {}]   ;;  %s1728_s3 = inlined_call_operand.vmem [shape: f32[64,1], index: 3, kind: input, shape index: {}]   ;;  %s1729_s4 = inlined_call_operand.vmem [shape: f32[128,64], index: 4, kind: input, shape index: {}]   ;;  %s1730_s5 = inlined_call_operand.vmem [shape: f32[128,1], index: 5, kind: input, shape index: {}]   ;;  %s1731_s6 = inlined_call_operand.hbm [shape: f32[2,64,256], index: 6, kind: output, shape index: {}]  }
   0x1   :  { %13 = vsyncpa [#allocation3 + $0x1], 0  ;;  %s1319_s21 = smov 0   ;;  %s1321_s22 = smov 0  }
   0x2   :  { %s1323_s23 = smov 0   ;;  %s1325_s24 = smov 0  }
   0x3   :  { %s1327_s25 = smov 0   ;;  %s1329_s26 = smov 0  }
   0x4 LB: > { %s1082_s27 = sadd.s32 4294967295, %s1277_s26   ;;  %s1083_s28 = sadd.s32 4294967294, %s1277_s26   ;;  %s1277_s26 = sphi %s1329_s26, %s19_s26   ;;  %s1273_s25 = sphi %s1327_s25, %s1738_s25   ;;  %s1269_s24 = sphi %s1325_s24, %s1737_s24   ;;  %s1265_s23 = sphi %s1323_s23, %s1736_s23   ;;  %s1261_s22 = sphi %s1321_s22, %s1735_s22   ;;  %s1257_s21 = sphi %s1319_s21, %s1734_s21  }
   0x5   : > { %s31_s29 = sadd.s32 1, %s1273_s25  ;;  %s180_s30 = sadd.s32 1, %s1265_s23 }
   0x6   : > { %p33_p0 = scmp.ge.s32.totalorder %s31_s29, 2  ;;  %p190_p1 = scmp.ne.s32.totalorder %s1265_s23, %s1261_s22 }
   0x7   : > { %p191_p2 = scmp.eq.s32.totalorder %s1082_s27, 1  ;;  %p196_p3 = scmp.ne.s32.totalorder %s1261_s22, %s1257_s21 }
   0x8   : > { %s1740_s29 = smov (%p33_p0, %s31_s29), 0  ;;  %p197_p5 = scmp.eq.s32.totalorder %s1083_s28, 1 }
   0x9   : > { %p1359_p4 = por %p191_p2, %p190_p1  ;;  %s175_s8 = ssub.s32 %s1273_s25, %s1740_s29 }
   0xa   : > { %p1086_p6 = scmp.ge.s32.totalorder %s1277_s26, 1  ;;  %p178_p7 = scmp.eq.s32.totalorder %s175_s8, 0 }
   0xb   : > { %p1366_p8 = por %p197_p5, %p196_p3  ;;  %p253_p9 = scmp.lt.s32.totalorder %s1277_s26, 3 }
   0xc   : > { %s1372_s10 = scalar_select %p178_p7, %s1265_s23, %s180_s30  }
   0xd   : > { %p254_p10 = pnand %p1086_p6, %p253_p9 }
   0xe   : > { %p297_p11 = scmp.lt.s32.totalorder (!%p254_p10), %s1269_s24, 1  ;;  %s1123_s14 = sshll.u32 (!%p254_p10), %s1269_s24, 11 }
   0xf   : > { %257 = sbr.rel (%p254_p10) target bundleno = 531 (0x213), region = 44  ;;  %s1672_s18 = scalar_lea.hbm (!%p254_p10), %s1731_s6, %s1123_s14 }
  0x10   : > { %s1281_s20 = smov (!%p254_p10), [#allocation2]  }
  0x14   : > { %v1279_v0 = vmov 0.0   ;;  %s1378_s11 = scalar_select %p297_p11, %s1269_s24, 1  ;;  %v1280_v1 = vmov 0   ;;  %v340_v2 = vld [vmem:[%s1728_s3 + $0x38] sm:$0xff]  ;;  %v338_v3 = vld [vmem:[%s1728_s3 + $0x28] sm:$0xff]  ;;  %v339_v4 = vld [vmem:[%s1728_s3 + $0x30] sm:$0xff] }
  0x15   : > { %470 = vmatprep.mubr.f32.mxu0 %v1279_v0  ;;  %822 = vmatprep.mubr.f32.mxu1 %v1279_v0  ;;  %v337_v5 = vld [vmem:[%s1728_s3 + $0x20] sm:$0xff]  ;;  %v336_v11 = vld [vmem:[%s1728_s3 + $0x18] sm:$0xff]  ;;  %v335_v13 = vld [vmem:[%s1728_s3 + $0x10] sm:$0xff]  ;;  %vm381_vm0 = vcmask 261120  }
  0x16   : > { %1199 = vset.pattern.permute.xlu0 %v1280_v1  ;;  %1200 = vset.pattern.permute.xlu1 %v1280_v1  ;;  %s1121_s16 = sshll.u32 %s1378_s11, 6  ;;  %v325_v16 = vld [vmem:[%s1727_s2] sm:$0xff]  ;;  %v334_v17 = vld [vmem:[%s1728_s3 + $0x8] sm:$0xff]  ;;  %v327_v22 = vld [vmem:[%s1727_s2 + $0x10] sm:$0xff] }
  0x17   : > { %378 = vperm.xlu0 %1199, %v340_v2   ;;  %368 = vperm.xlu1 %1200, %v338_v3   ;;  %s304_s27 = scalar_lea.vmem %s1725_s0, %s1121_s16  ;;  %v333_v18 = vld [vmem:[%s1728_s3] sm:$0xff]  ;;  %v326_v19 = vld [vmem:[%s1727_s2 + $0x8] sm:$0xff]  ;;  %v585_v23 = vld [vmem:[%s1730_s5 + $0x10] sm:$0xff] }
  0x18   : > { %v324_v6 = vld [vmem:[%s304_s27 + $0x38] sm:$0xff]  ;;  %v323_v7 = vld [vmem:[%s304_s27 + $0x30] sm:$0xff]  ;;  %v322_v8 = vld [vmem:[%s304_s27 + $0x28] sm:$0xff] }
  0x19   : > { %430 = vmatprep.subr.mxu0 %v324_v6  ;;  %v321_v9 = vld [vmem:[%s304_s27 + $0x20] sm:$0xff]  ;;  %v320_v10 = vld [vmem:[%s304_s27 + $0x18] sm:$0xff]  ;;  %v319_v12 = vld [vmem:[%s304_s27 + $0x10] sm:$0xff] }
  0x1a   : > { %431 = vmatpush1.msra.mxu0 %v323_v7  ;;  %v318_v14 = vld [vmem:[%s304_s27 + $0x8] sm:$0xff]  ;;  %v317_v15 = vld [vmem:[%s304_s27] sm:$0xff]  ;;  %v586_v24 = vld [vmem:[%s1730_s5 + $0x18] sm:$0xff]  ;;  %s1122_s27 = sshll.u32 %s1378_s11, 7  ;;  %s293_s11 = sand.u32 1, %s1261_s22  }
  0x1b   : > { %373 = vperm.xlu0 %1199, %v339_v4   ;;  %363 = vperm.xlu1 %1200, %v337_v5   ;;  %v583_v20 = vld [vmem:[%s1730_s5] sm:$0xff]  ;;  %v584_v21 = vld [vmem:[%s1730_s5 + $0x8] sm:$0xff]  ;;  %v328_v25 = vld [vmem:[%s1727_s2 + $0x18] sm:$0xff]  ;;  %s1610_s8 = scalar_lea.vmem %s1726_s1, %s1122_s27  ;;  %s1087_s12 = sshll.u32 %s293_s11, 7 }
  0x1c   : > { %432 = vmatprep.subr.mxu0 %v322_v8  ;;  %v587_v26 = vld [vmem:[%s1730_s5 + $0x20] sm:$0xff]  ;;  %v588_v27 = vld [vmem:[%s1730_s5 + $0x28] sm:$0xff]  ;;  %v589_v29 = vld [vmem:[%s1730_s5 + $0x30] sm:$0xff]  ;;  %s1626_s13 = scalar_lea.vmem [#allocation2], %s1087_s12  ;;  %s1680_s24 = scalar_lea.sflag [#allocation3], %s293_s11 }
  0x1d   : > { %433 = vmatpush1.msra.mxu0 %v321_v9  ;;  %v329_v28 = vld [vmem:[%s1727_s2 + $0x20] sm:$0xff]  ;;  %v590_v30 = vld [vmem:[%s1730_s5 + $0x38] sm:$0xff]  ;;  %v330_v31 = vld [vmem:[%s1727_s2 + $0x28] sm:$0xff]  ;;  %s985_s15 = sshll.u32 %s1626_s13, 4  ;;  %s1205_s27 = sshll.u32 %s1281_s20, 4  ;;  %s1674_s15 = int_to_ptr.vmem [resolvable:$true] %s985_s15  ;;  %s1206_s27 = int_to_ptr.vmem [resolvable:$false] %s1205_s27 }
  0x1e   : > { %434 = vmatprep.subr.mxu0 %v320_v10  ;;  %v591_v32 = vld [vmem:[%s1730_s5 + $0x40] sm:$0xff]  ;;  %v592_v33 = vld [vmem:[%s1730_s5 + $0x48] sm:$0xff]  ;;  %v331_v34 = vld [vmem:[%s1727_s2 + $0x30] sm:$0xff]  ;;  %s1201_s19 = scalar_lea.vmem %s1674_s15, 2048  ;;  %s1207_s28 = scalar_lea.vmem %s1206_s27, 4096 }
  0x1f   : > { %358 = vperm.xlu0 %1199, %v336_v11   ;;  %435 = vmatpush1.msra.mxu0 %v319_v12  ;;  %v593_v35 = vld [vmem:[%s1730_s5 + $0x50] sm:$0xff]  ;;  %v594_v36 = vld [vmem:[%s1730_s5 + $0x58] sm:$0xff]  ;;  %v595_v38 = vld [vmem:[%s1730_s5 + $0x60] sm:$0xff]  ;;  %p1202_p12 = scmp.ne.s32.totalorder %s1674_s15, %s1201_s19  ;;  %p1208_p1 = scmp.lt.s32.totalorder %s1674_s15, %s1206_s27 }
  0x20   : > { %353 = vperm.xlu1 %1200, %v335_v13   ;;  %436 = vmatprep.subr.mxu0 %v318_v14  ;;  %v332_v37 = vld [vmem:[%s1727_s2 + $0x38] sm:$0xff]  ;;  %v596_v39 = vld [vmem:[%s1730_s5 + $0x68] sm:$0xff]  ;;  %v597_v40 = vld [vmem:[%s1730_s5 + $0x70] sm:$0xff]  ;;  %p1209_p2 = scmp.lt.s32.totalorder %s1207_s28, %s1201_s19 }
  0x21   : > { %437 = vmatpush1.msra.mxu0 %v317_v15  ;;  %v598_v41 = vld [vmem:[%s1730_s5 + $0x78] sm:$0xff]  ;;  %p1203_p13 = pnand %p1202_p12, %p1359_p4 }
  0x22   : > { %1092 = vmatmul.mubr.msk.f32.vlgmr.msra.gmra.mxu0 %vm381_vm0, %v325_v16  ;;  %p1210_p3 = por %p1209_p2, %p1208_p1 }
  0x23   : > { %348 = vperm.xlu0 %1199, %v334_v17   ;;  %476 = vmatprep.mubr.f32.mxu0 %v1279_v0  ;;  %p1204_p0 = pneg %p1203_p13 }
  0x24   : > { %343 = vperm.xlu1 %1200, %v333_v18  }
  0x25   : > { %p1211_p5 = pnand %p1210_p3, %p1204_p0 }
  0x26   : > { %1093 = vmatmul.mubr.msk.f32.gmra.mxu0 %vm381_vm0, %v326_v19 }
  0x27   : > { %601 = vperm.xlu0 %1199, %v583_v20   ;;  %482 = vmatprep.mubr.f32.mxu0 %v1279_v0 }
  0x28   : > { %606 = vperm.xlu1 %1200, %v584_v21  }
  0x2a   : > { %1094 = vmatmul.mubr.msk.f32.gmra.mxu0 %vm381_vm0, %v327_v22 }
  0x2b   : > { %611 = vperm.xlu0 %1199, %v585_v23   ;;  %488 = vmatprep.mubr.f32.mxu0 %v1279_v0 }
  0x2c   : > { %616 = vperm.xlu1 %1200, %v586_v24  }
  0x2e   : > { %1095 = vmatmul.mubr.msk.f32.gmra.mxu0 %vm381_vm0, %v328_v25 }
  0x2f   : > { %621 = vperm.xlu0 %1199, %v587_v26   ;;  %494 = vmatprep.mubr.f32.mxu0 %v1279_v0 }
  0x30   : > { %626 = vperm.xlu1 %1200, %v588_v27  }
  0x32   : > { %1096 = vmatmul.mubr.msk.f32.gmra.mxu0 %vm381_vm0, %v329_v28 }
  0x33   : > { %631 = vperm.xlu0 %1199, %v589_v29   ;;  %500 = vmatprep.mubr.f32.mxu0 %v1279_v0 }
  0x34   : > { %636 = vperm.xlu1 %1200, %v590_v30  }
  0x36   : > { %1097 = vmatmul.mubr.msk.f32.gmra.mxu0 %vm381_vm0, %v330_v31 }
  0x37   : > { %641 = vperm.xlu0 %1199, %v591_v32   ;;  %506 = vmatprep.mubr.f32.mxu0 %v1279_v0 }
  0x38   : > { %646 = vperm.xlu1 %1200, %v592_v33  }
  0x3a   : > { %1098 = vmatmul.mubr.msk.f32.gmra.mxu0 %vm381_vm0, %v331_v34 }
  0x3b   : > { %651 = vperm.xlu0 %1199, %v593_v35   ;;  %512 = vmatprep.mubr.f32.mxu0 %v1279_v0 }
  0x3c   : > { %656 = vperm.xlu1 %1200, %v594_v36  }
  0x3e   : > { %1099 = vmatmul.mubr.msk.f32.gmra.mxu0 %vm381_vm0, %v332_v37 }
  0x3f   : > { %661 = vperm.xlu0 %1199, %v595_v38   ;;  %792 = vmatprep.mubr.f32.mxu0 %v1279_v0 }
  0x40   : > { %666 = vperm.xlu1 %1200, %v596_v39  }
  0x43   : > { %671 = vperm.xlu0 %1199, %v597_v40  }
  0x44   : > { %676 = vperm.xlu1 %1200, %v598_v41  }
  0x92   : > { %v379_v52 = vpop.permute.xlu0 %378  ;;  %v369_v54 = vpop.permute.xlu1 %368 }
  0x96   : > { %v374_v57 = vpop.permute.xlu0 %373  ;;  %v364_v59 = vpop.permute.xlu1 %363 }
  0x9a   : > { %v359_v4 = vpop.permute.xlu0 %358 }
  0x9b   : > { %v354_v8 = vpop.permute.xlu1 %353 }
  0x9e   : > { %v349_v22 = vpop.permute.xlu0 %348 }
  0x9f   : > { %v344_v26 = vpop.permute.xlu1 %343 }
  0xe2   : > { %v1496_v42 = vpop.f32.mrf.mxu0 }
  0xe3   : > { %v473_v36 = vadd.f32 %v1496_v42, %v344_v26 }
  0xe4   : > { %v1498_v43 = vpop.f32.mrf.mxu0 }
  0xe5   : > { %v475_v33 = vadd.f32 %v1498_v43, %v344_v26  ;;  %vm519_vm0 = vcmp.ge.f32.partialorder %v473_v36, 0.0 }
  0xe6   : > { %v1500_v44 = vpop.f32.mrf.mxu0 }
  0xe7   : > { %v479_v30 = vadd.f32 %v1500_v44, %v349_v22  ;;  %v536_v44 = vmul.f32 0.1, %v475_v33  ;;  %vm520_vm15 = vcmp.ge.f32.partialorder %v475_v33, 0.0 }
  0xe8   : > { %v480_v45 = vpop.f32.mrf.mxu0 }
  0xe9   : > { %v481_v27 = vadd.f32 %v480_v45, %v349_v22  ;;  %v537_v41 = vmul.f32 0.1, %v479_v30  ;;  %vm521_vm14 = vcmp.ge.f32.partialorder %v479_v30, 0.0  ;;  %v535_v45 = vmul.f32 0.1, %v473_v36 }
  0xea   : > { %v484_v46 = vpop.f32.mrf.mxu0 }
  0xeb   : > { %v485_v23 = vadd.f32 %v484_v46, %v354_v8  ;;  %v538_v39 = vmul.f32 0.1, %v481_v27  ;;  %vm522_vm13 = vcmp.ge.f32.partialorder %v481_v27, 0.0 }
  0xec   : > { %v486_v47 = vpop.f32.mrf.mxu0 }
  0xed   : > { %v487_v19 = vadd.f32 %v486_v47, %v354_v8  ;;  %v539_v37 = vmul.f32 0.1, %v485_v23  ;;  %vm523_vm12 = vcmp.ge.f32.partialorder %v485_v23, 0.0  ;;  %v554_v47 = vsel %vm522_vm13, %v481_v27, %v538_v39 }
  0xee   : > { %v490_v48 = vpop.f32.mrf.mxu0 }
  0xef   : > { %v491_v16 = vadd.f32 %v490_v48, %v359_v4  ;;  %v540_v34 = vmul.f32 0.1, %v487_v19  ;;  %vm524_vm11 = vcmp.ge.f32.partialorder %v487_v19, 0.0  ;;  %v555_v46 = vsel %vm523_vm12, %v485_v23, %v539_v37  ;;  %v889_v23 = vld [vmem:[%s1610_s8] sm:$0xff] }
  0xf0   : > { %v492_v49 = vpop.f32.mrf.mxu0  ;;  %v553_v48 = vsel %vm521_vm14, %v479_v30, %v537_v41 }
  0xf1   : > { %v493_v13 = vadd.f32 %v492_v49, %v359_v4  ;;  %v541_v31 = vmul.f32 0.1, %v491_v16  ;;  %vm525_vm10 = vcmp.ge.f32.partialorder %v491_v16, 0.0  ;;  %v556_v42 = vsel %vm524_vm11, %v487_v19, %v540_v34  ;;  %v602_v4 = vpop.permute.xlu0 %601 }
  0xf2   : > { %v496_v50 = vpop.f32.mrf.mxu0  ;;  %v552_v49 = vsel %vm520_vm15, %v475_v33, %v536_v44 }
  0xf3   : > { %v497_v11 = vadd.f32 %v496_v50, %v364_v59  ;;  %v542_v28 = vmul.f32 0.1, %v493_v13  ;;  %vm526_vm9 = vcmp.ge.f32.partialorder %v493_v13, 0.0  ;;  %v557_v43 = vsel %vm525_vm10, %v491_v16, %v541_v31  ;;  %v567_v50 = vld [vmem:[%s1729_s4] sm:$0xff]  ;;  %v890_v31 = vld [vmem:[%s1610_s8 + $0x8] sm:$0xff] }
  0xf4   : > { %v498_v51 = vpop.f32.mrf.mxu0 }
  0xf5   : > { %v499_v5 = vadd.f32 %v498_v51, %v364_v59  ;;  %v543_v24 = vmul.f32 0.1, %v497_v11  ;;  %vm527_vm8 = vcmp.ge.f32.partialorder %v497_v11, 0.0  ;;  %v558_v40 = vsel %vm526_vm9, %v493_v13, %v542_v28  ;;  %v572_v51 = vld [vmem:[%s1729_s4 + $0x28] sm:$0xff]  ;;  %v571_v59 = vld [vmem:[%s1729_s4 + $0x20] sm:$0xff] }
  0xf6   : > { %v502_v53 = vpop.f32.mrf.mxu0 }
  0xf7   : > { %v503_v6 = vadd.f32 %v502_v53, %v369_v54  ;;  %v544_v20 = vmul.f32 0.1, %v499_v5  ;;  %vm528_vm7 = vcmp.ge.f32.partialorder %v499_v5, 0.0  ;;  %v559_v38 = vsel %vm527_vm8, %v497_v11, %v543_v24  ;;  %v568_v53 = vld [vmem:[%s1729_s4 + $0x8] sm:$0xff] }
  0xf8   : > { %v504_v55 = vpop.f32.mrf.mxu0 }
  0xf9   : > { %v505_v2 = vadd.f32 %v504_v55, %v369_v54  ;;  %v545_v17 = vmul.f32 0.1, %v503_v6  ;;  %vm529_vm6 = vcmp.ge.f32.partialorder %v503_v6, 0.0  ;;  %v560_v35 = vsel %vm528_vm7, %v499_v5, %v544_v20  ;;  %v573_v54 = vld [vmem:[%s1729_s4 + $0x30] sm:$0xff]  ;;  %v612_v5 = vpop.permute.xlu0 %611 }
  0xfa   : > { %v508_v56 = vpop.f32.mrf.mxu0  ;;  %v569_v55 = vld [vmem:[%s1729_s4 + $0x10] sm:$0xff] }
  0xfb   : > { %v509_v63 = vadd.f32 %v508_v56, %v374_v57  ;;  %v546_v14 = vmul.f32 0.1, %v505_v2  ;;  %vm530_vm5 = vcmp.ge.f32.partialorder %v505_v2, 0.0  ;;  %v561_v32 = vsel %vm529_vm6, %v503_v6, %v545_v17  ;;  %v574_v56 = vld [vmem:[%s1729_s4 + $0x38] sm:$0xff]  ;;  %v607_v6 = vpop.permute.xlu1 %606 }
  0xfc   : > { %v510_v58 = vpop.f32.mrf.mxu0 }
  0xfd   : > { %v511_v61 = vadd.f32 %v510_v58, %v374_v57  ;;  %v547_v12 = vmul.f32 0.1, %v509_v63  ;;  %vm531_vm4 = vcmp.ge.f32.partialorder %v509_v63, 0.0  ;;  %v562_v29 = vsel %vm530_vm5, %v505_v2, %v546_v14  ;;  %v570_v57 = vld [vmem:[%s1729_s4 + $0x18] sm:$0xff]  ;;  %v575_v58 = vld [vmem:[%s1729_s4 + $0x40] sm:$0xff]  ;;  %v581_v2 = vld [vmem:[%s1729_s4 + $0x70] sm:$0xff] }
  0xfe   : > { %v514_v60 = vpop.f32.mrf.mxu0 }
  0xff   : > { %v515_v62 = vadd.f32 %v514_v60, %v379_v52  ;;  %v548_v9 = vmul.f32 0.1, %v511_v61  ;;  %vm532_vm3 = vcmp.ge.f32.partialorder %v511_v61, 0.0  ;;  %v563_v25 = vsel %vm531_vm4, %v509_v63, %v547_v12  ;;  %v576_v60 = vld [vmem:[%s1729_s4 + $0x48] sm:$0xff]  ;;  %v579_v63 = vld [vmem:[%s1729_s4 + $0x60] sm:$0xff]  ;;  %v617_v8 = vpop.permute.xlu1 %616 }
 0x100   : > { %v516_v1 = vpop.f32.mrf.mxu0 }
 0x101   : > { %v517_v3 = vadd.f32 %v516_v1, %v379_v52  ;;  %v549_v7 = vmul.f32 0.1, %v515_v62  ;;  %vm533_vm1 = vcmp.ge.f32.partialorder %v515_v62, 0.0  ;;  %v564_v21 = vsel %vm532_vm3, %v511_v61, %v548_v9  ;;  %v577_v61 = vld [vmem:[%s1729_s4 + $0x50] sm:$0xff]  ;;  %v580_v1 = vld [vmem:[%s1729_s4 + $0x68] sm:$0xff] }
 0x102   : > { %v551_v52 = vsel %vm519_vm0, %v473_v36, %v535_v45 }
 0x103   : > { %v550_v10 = vmul.f32 0.1, %v517_v3  ;;  %vm534_vm2 = vcmp.ge.f32.partialorder %v517_v3, 0.0  ;;  %v565_v18 = vsel %vm533_vm1, %v515_v62, %v549_v7  ;;  %vm679_vm1 = vcmask 523264   ;;  %v578_v62 = vld [vmem:[%s1729_s4 + $0x58] sm:$0xff]  ;;  %v1592_v7 = vpop.permute.xlu0 %621 }
 0x105   : > { %v566_v15 = vsel %vm534_vm2, %v517_v3, %v550_v10  ;;  %v582_v3 = vld [vmem:[%s1729_s4 + $0x78] sm:$0xff] }
 0x106   : > { %744 = vmatprep.subr.mxu0 %v566_v15  ;;  %1124 = vmatprep.subr.mxu1 %v566_v15  ;;  %v1603_v15 = vpop.permute.xlu1 %626 }
 0x107   : > { %745 = vmatpush1.msra.mxu0 %v565_v18  ;;  %1132 = vmatpush1.msra.mxu1 %v565_v18  ;;  %v1601_v14 = vpop.permute.xlu0 %631 }
 0x108   : > { %746 = vmatprep.subr.mxu0 %v564_v21  ;;  %1125 = vmatprep.subr.mxu1 %v564_v21 }
 0x109   : > { %747 = vmatpush1.msra.mxu0 %v563_v25  ;;  %1133 = vmatpush1.msra.mxu1 %v563_v25 }
 0x10a   : > { %748 = vmatprep.subr.mxu0 %v562_v29  ;;  %1126 = vmatprep.subr.mxu1 %v562_v29  ;;  %v1618_v28 = vpop.permute.xlu1 %636 }
 0x10b   : > { %749 = vmatpush1.msra.mxu0 %v561_v32  ;;  %1134 = vmatpush1.msra.mxu1 %v561_v32  ;;  %v642_v27 = vpop.permute.xlu0 %641 }
 0x10c   : > { %750 = vmatprep.subr.mxu0 %v560_v35  ;;  %1127 = vmatprep.subr.mxu1 %v560_v35 }
 0x10d   : > { %751 = vmatpush1.msra.mxu0 %v559_v38  ;;  %1135 = vmatpush1.msra.mxu1 %v559_v38 }
 0x10e   : > { %752 = vmatprep.subr.mxu0 %v558_v40  ;;  %1128 = vmatprep.subr.mxu1 %v558_v40 }
 0x10f   : > { %753 = vmatpush1.msra.mxu0 %v557_v43  ;;  %1136 = vmatpush1.msra.mxu1 %v557_v43  ;;  %v891_v43 = vld [vmem:[%s1610_s8 + $0x10] sm:$0xff] }
 0x110   : > { %754 = vmatprep.subr.mxu0 %v556_v42  ;;  %1129 = vmatprep.subr.mxu1 %v556_v42 }
 0x111   : > { %755 = vmatpush1.msra.mxu0 %v555_v46  ;;  %1137 = vmatpush1.msra.mxu1 %v555_v46  ;;  %v892_v46 = vld [vmem:[%s1610_s8 + $0x18] sm:$0xff] }
 0x112   : > { %756 = vmatprep.subr.mxu0 %v554_v47  ;;  %1130 = vmatprep.subr.mxu1 %v554_v47 }
 0x113   : > { %757 = vmatpush1.msra.mxu0 %v553_v48  ;;  %1138 = vmatpush1.msra.mxu1 %v553_v48 }
 0x114   : > { %758 = vmatprep.subr.mxu0 %v552_v49  ;;  %1131 = vmatprep.subr.mxu1 %v552_v49 }
 0x115   : > { %759 = vmatpush1.msra.mxu0 %v551_v52  ;;  %1139 = vmatpush1.msra.mxu1 %v551_v52 }
 0x116   : > { %1100 = vmatmul.mubr.msk.f32.vlgmr.msra.gmra.mxu0 %vm679_vm1, %v567_v50  ;;  %1105 = vmatmul.mubr.msk.f32.vlgmr.msra.gmra.mxu1 %vm679_vm1, %v572_v51  ;;  %v647_v50 = vpop.permute.xlu1 %646  ;;  %v893_v51 = vld [vmem:[%s1610_s8 + $0x20] sm:$0xff] }
 0x117   : > { %798 = vmatprep.mubr.f32.mxu0 %v1279_v0  ;;  %828 = vmatprep.mubr.f32.mxu1 %v1279_v0 }
 0x11a   : > { %1101 = vmatmul.mubr.msk.f32.gmra.mxu0 %vm679_vm1, %v568_v53  ;;  %1106 = vmatmul.mubr.msk.f32.gmra.mxu1 %vm679_vm1, %v573_v54 }
 0x11b   : > { %804 = vmatprep.mubr.f32.mxu0 %v1279_v0  ;;  %834 = vmatprep.mubr.f32.mxu1 %v1279_v0 }
 0x11e   : > { %1102 = vmatmul.mubr.msk.f32.gmra.mxu0 %vm679_vm1, %v569_v55  ;;  %1107 = vmatmul.mubr.msk.f32.gmra.mxu1 %vm679_vm1, %v574_v56 }
 0x11f   : > { %810 = vmatprep.mubr.f32.mxu0 %v1279_v0  ;;  %840 = vmatprep.mubr.f32.mxu1 %v1279_v0 }
 0x122   : > { %1103 = vmatmul.mubr.msk.f32.gmra.mxu0 %vm679_vm1, %v570_v57  ;;  %1108 = vmatmul.mubr.msk.f32.gmra.mxu1 %vm679_vm1, %v575_v58  ;;  %v652_v58 = vpop.permute.xlu0 %651 }
 0x123   : > { %816 = vmatprep.mubr.f32.mxu0 %v1279_v0  ;;  %846 = vmatprep.mubr.f32.mxu1 %v1279_v0 }
 0x126   : > { %1104 = vmatmul.mubr.msk.f32.gmra.mxu0 %vm679_vm1, %v571_v59  ;;  %1109 = vmatmul.mubr.msk.f32.gmra.mxu1 %vm679_vm1, %v576_v60  ;;  %v894_v60 = vld [vmem:[%s1610_s8 + $0x28] sm:$0xff] }
 0x127   : > { %852 = vmatprep.mubr.f32.mxu1 %v1279_v0 }
 0x12a   : > { %1110 = vmatmul.mubr.msk.f32.gmra.mxu1 %vm679_vm1, %v577_v61 }
 0x12b   : > { %858 = vmatprep.mubr.f32.mxu1 %v1279_v0 }
 0x12e   : > { %1111 = vmatmul.mubr.msk.f32.gmra.mxu1 %vm679_vm1, %v578_v62 }
 0x12f   : > { %864 = vmatprep.mubr.f32.mxu1 %v1279_v0 }
 0x132   : > { %1112 = vmatmul.mubr.msk.f32.gmra.mxu1 %vm679_vm1, %v579_v63 }
 0x133   : > { %870 = vmatprep.mubr.f32.mxu1 %v1279_v0 }
 0x136   : > { %1113 = vmatmul.mubr.msk.f32.gmra.mxu1 %vm679_vm1, %v580_v1 }
 0x137   : > { %876 = vmatprep.mubr.f32.mxu1 %v1279_v0 }
 0x13a   : > { %1114 = vmatmul.mubr.msk.f32.gmra.mxu1 %vm679_vm1, %v581_v2 }
 0x13b   : > { %882 = vmatprep.mubr.f32.mxu1 %v1279_v0 }
 0x13e   : > { %1115 = vmatmul.mubr.msk.f32.gmra.mxu1 %vm679_vm1, %v582_v3 }
 0x1d6   : > { %v794_v9 = vpop.f32.mrf.mxu0  ;;  %v1594_v10 = vpop.f32.mrf.mxu1 }
 0x1d7   : > { %v795_v16 = vadd.f32 %v794_v9, %v602_v4 }
 0x1d8   : > { %v796_v11 = vpop.f32.mrf.mxu0  ;;  %v1596_v12 = vpop.f32.mrf.mxu1 }
 0x1d9   : > { %v797_v19 = vadd.f32 %v796_v11, %v602_v4  ;;  %v905_v22 = vadd.f32 1.0, %v795_v16 }
 0x1da   : > { %v800_v0 = vpop.f32.mrf.mxu0  ;;  %v1599_v13 = vpop.f32.mrf.mxu1 }
 0x1db   : > { %v801_v24 = vadd.f32 %v800_v0, %v607_v6  ;;  %v906_v29 = vadd.f32 1.0, %v797_v19  ;;  %v921_v35 = vmul.f32 %v905_v22, %v889_v23  ;;  %v895_v0 = vld [vmem:[%s1610_s8 + $0x30] sm:$0xff]  ;;  %v657_v22 = vpop.permute.xlu1 %656  ;;  %v825_v23 = vadd.f32 %v1594_v10, %v1603_v15 }
 0x1dc   : > { %v802_v17 = vpop.f32.mrf.mxu0  ;;  %v1605_v18 = vpop.f32.mrf.mxu1 }
 0x1dd   : > { %v803_v30 = vadd.f32 %v802_v17, %v607_v6  ;;  %v907_v37 = vadd.f32 1.0, %v801_v24  ;;  %v922_v41 = vmul.f32 %v906_v29, %v890_v31  ;;  %v896_v24 = vld [vmem:[%s1610_s8 + $0x38] sm:$0xff] }
 0x1de   : > { %v806_v20 = vpop.f32.mrf.mxu0  ;;  %v1612_v21 = vpop.f32.mrf.mxu1 }
 0x1df   : > { %v807_v32 = vadd.f32 %v806_v20, %v612_v5  ;;  %v908_v44 = vadd.f32 1.0, %v803_v30  ;;  %v923_v54 = vmul.f32 %v907_v37, %v891_v43  ;;  %v662_v37 = vpop.permute.xlu0 %661  ;;  %v831_v43 = vadd.f32 %v1599_v13, %v1601_v14 }
 0x1e0   : > { %v808_v25 = vpop.f32.mrf.mxu0  ;;  %v1616_v26 = vpop.f32.mrf.mxu1 }
 0x1e1   : > { %v809_v38 = vadd.f32 %v808_v25, %v612_v5  ;;  %v909_v47 = vadd.f32 1.0, %v807_v32  ;;  %v924_v59 = vmul.f32 %v908_v44, %v892_v46  ;;  %v897_v32 = vld [vmem:[%s1610_s8 + $0x40] sm:$0xff]  ;;  %v900_v46 = vld [vmem:[%s1610_s8 + $0x58] sm:$0xff] }
 0x1e2   : > { %v812_v33 = vpop.f32.mrf.mxu0  ;;  %v842_v34 = vpop.f32.mrf.mxu1 }
 0x1e3   : > { %v843_v36 = vadd.f32 %v842_v34, %v642_v27  ;;  %v813_v52 = vadd.f32 %v812_v33, %v617_v8  ;;  %v910_v55 = vadd.f32 1.0, %v809_v38  ;;  %v925_v63 = vmul.f32 %v909_v47, %v893_v51  ;;  %v667_v51 = vpop.permute.xlu1 %666 }
 0x1e4   : > { %v814_v39 = vpop.f32.mrf.mxu0  ;;  %v844_v40 = vpop.f32.mrf.mxu1  ;;  %v915_v38 = vadd.f32 1.0, %v825_v23  ;;  %v833_v47 = vadd.f32 %v1605_v18, %v1601_v14  ;;  %v901_v14 = vld [vmem:[%s1610_s8 + $0x60] sm:$0xff] }
 0x1e5   : > { %v937_v42 = vadd.f32 %v921_v35, %v843_v36  ;;  %v845_v45 = vadd.f32 %v844_v40, %v642_v27  ;;  %v815_v61 = vadd.f32 %v814_v39, %v617_v8  ;;  %v911_v4 = vadd.f32 1.0, %v813_v52  ;;  %v898_v39 = vld [vmem:[%s1610_s8 + $0x48] sm:$0xff] }
 0x1e6   : > { %v818_v48 = vpop.f32.mrf.mxu0  ;;  %v848_v49 = vpop.f32.mrf.mxu1  ;;  %v926_v11 = vmul.f32 %v910_v55, %v894_v60 }
 0x1e7   : > { %953 = vst [vmem:[%s1626_s13] sm:$0xff] %v937_v42  ;;  %v938_v53 = vadd.f32 %v922_v41, %v845_v45  ;;  %v849_v56 = vadd.f32 %v848_v49, %v647_v50  ;;  %v819_v5 = vadd.f32 %v818_v48, %v1592_v7  ;;  %v912_v8 = vadd.f32 1.0, %v815_v61  ;;  %v899_v41 = vld [vmem:[%s1610_s8 + $0x50] sm:$0xff] }
 0x1e8   : > { %v850_v57 = vpop.f32.mrf.mxu1  ;;  %v820_v2 = vpop.f32.mrf.mxu0  ;;  %v927_v27 = vmul.f32 %v911_v4, %v895_v0  ;;  %v931_v52 = vmul.f32 %v915_v38, %v899_v41 }
 0x1e9   : > { %954 = vst [vmem:[%s1626_s13 + $0x8] sm:$0xff] %v938_v53  ;;  %v851_v62 = vadd.f32 %v850_v57, %v647_v50  ;;  %v939_v1 = vadd.f32 %v923_v54, %v849_v56  ;;  %v821_v17 = vadd.f32 %v820_v2, %v1592_v7  ;;  %v913_v29 = vadd.f32 1.0, %v819_v5  ;;  %v903_v5 = vld [vmem:[%s1610_s8 + $0x70] sm:$0xff]  ;;  %v677_v0 = vpop.permute.xlu1 %676 }
 0x1ea   : > { %v854_v3 = vpop.f32.mrf.mxu1  ;;  %v827_v7 = vadd.f32 %v1596_v12, %v1603_v15  ;;  %v928_v34 = vmul.f32 %v912_v8, %v896_v24  ;;  %v917_v53 = vadd.f32 1.0, %v831_v43  ;;  %v837_v54 = vadd.f32 %v1612_v21, %v1618_v28 }
 0x1eb   : > { %v940_v6 = vadd.f32 %v924_v59, %v851_v62  ;;  %v855_v9 = vadd.f32 %v854_v3, %v652_v58  ;;  %955 = vst [vmem:[%s1626_s13 + $0x10] sm:$0xff] %v939_v1  ;;  %v914_v35 = vadd.f32 1.0, %v821_v17  ;;  %v929_v44 = vmul.f32 %v913_v29, %v897_v32  ;;  %v672_v62 = vpop.permute.xlu0 %671 }
 0x1ec   : > { %v856_v16 = vpop.f32.mrf.mxu1  ;;  %v916_v42 = vadd.f32 1.0, %v827_v7  ;;  %v839_v59 = vadd.f32 %v1616_v26, %v1618_v28  ;;  %v933_v1 = vmul.f32 %v917_v53, %v901_v14  ;;  %v919_v2 = vadd.f32 1.0, %v837_v54 }
 0x1ed   : > { %956 = vst [vmem:[%s1626_s13 + $0x18] sm:$0xff] %v940_v6  ;;  %v941_v19 = vadd.f32 %v925_v63, %v855_v9  ;;  %v857_v20 = vadd.f32 %v856_v16, %v652_v58  ;;  %v930_v48 = vmul.f32 %v914_v35, %v898_v39  ;;  %v918_v58 = vadd.f32 1.0, %v833_v47  ;;  %v902_v63 = vld [vmem:[%s1610_s8 + $0x68] sm:$0xff]  ;;  %v904_v16 = vld [vmem:[%s1610_s8 + $0x78] sm:$0xff] }
 0x1ee   : > { %v860_v25 = vpop.f32.mrf.mxu1  ;;  %v932_v57 = vmul.f32 %v916_v42, %v900_v46  ;;  %v920_v26 = vadd.f32 1.0, %v839_v59  ;;  %v935_v17 = vmul.f32 %v919_v2, %v903_v5 }
 0x1ef   : > { %957 = vst [vmem:[%s1626_s13 + $0x20] sm:$0xff] %v941_v19  ;;  %v942_v30 = vadd.f32 %v926_v11, %v857_v20  ;;  %v861_v31 = vadd.f32 %v860_v25, %v657_v22  ;;  %v934_v9 = vmul.f32 %v918_v58, %v902_v63 }
 0x1f0   : > { %v862_v33 = vpop.f32.mrf.mxu1  ;;  %v936_v23 = vmul.f32 %v920_v26, %v904_v16 }
 0x1f1   : > { %958 = vst [vmem:[%s1626_s13 + $0x28] sm:$0xff] %v942_v30  ;;  %v943_v10 = vadd.f32 %v927_v27, %v861_v31  ;;  %v863_v36 = vadd.f32 %v862_v33, %v657_v22 }
 0x1f2   : > { %v866_v40 = vpop.f32.mrf.mxu1 }
 0x1f3   : > { %959 = vst [vmem:[%s1626_s13 + $0x30] sm:$0xff] %v943_v10  ;;  %v944_v12 = vadd.f32 %v928_v34, %v863_v36  ;;  %v867_v15 = vadd.f32 %v866_v40, %v662_v37 }
 0x1f4   : > { %v868_v45 = vpop.f32.mrf.mxu1 }
 0x1f5   : > { %960 = vst [vmem:[%s1626_s13 + $0x38] sm:$0xff] %v944_v12  ;;  %v945_v49 = vadd.f32 %v929_v44, %v867_v15  ;;  %v869_v50 = vadd.f32 %v868_v45, %v662_v37 }
 0x1f6   : > { %v872_v13 = vpop.f32.mrf.mxu1 }
 0x1f7   : > { %961 = vst [vmem:[%s1626_s13 + $0x40] sm:$0xff] %v945_v49  ;;  %v946_v55 = vadd.f32 %v930_v48, %v869_v50  ;;  %v873_v56 = vadd.f32 %v872_v13, %v667_v51 }
 0x1f8   : > { %v874_v18 = vpop.f32.mrf.mxu1 }
 0x1f9   : > { %962 = vst [vmem:[%s1626_s13 + $0x48] sm:$0xff] %v946_v55  ;;  %v947_v60 = vadd.f32 %v931_v52, %v873_v56  ;;  %v875_v61 = vadd.f32 %v874_v18, %v667_v51 }
 0x1fa   : > { %v878_v21 = vpop.f32.mrf.mxu1 }
 0x1fb   : > { %963 = vst [vmem:[%s1626_s13 + $0x50] sm:$0xff] %v947_v60  ;;  %v948_v3 = vadd.f32 %v932_v57, %v875_v61  ;;  %v879_v4 = vadd.f32 %v878_v21, %v672_v62 }
 0x1fc   : > { %v880_v6 = vpop.f32.mrf.mxu1 }
 0x1fd   : > { %964 = vst [vmem:[%s1626_s13 + $0x58] sm:$0xff] %v948_v3  ;;  %v949_v28 = vadd.f32 %v933_v1, %v879_v4  ;;  %v881_v11 = vadd.f32 %v880_v6, %v672_v62 }
 0x1fe   : > { %v884_v8 = vpop.f32.mrf.mxu1 }
 0x1ff   : > { %965 = vst [vmem:[%s1626_s13 + $0x60] sm:$0xff] %v949_v28  ;;  %v950_v19 = vadd.f32 %v934_v9, %v881_v11  ;;  %v885_v20 = vadd.f32 %v884_v8, %v677_v0 }
 0x200   : > { %v886_v22 = vpop.f32.mrf.mxu1 }
 0x201   : > { %966 = vst [vmem:[%s1626_s13 + $0x68] sm:$0xff] %v950_v19  ;;  %v951_v24 = vadd.f32 %v935_v17, %v885_v20  ;;  %v887_v25 = vadd.f32 %v886_v22, %v677_v0 }
 0x203   : > { %967 = vst [vmem:[%s1626_s13 + $0x70] sm:$0xff] %v951_v24  ;;  %v952_v27 = vadd.f32 %v936_v23, %v887_v25 }
 0x205   : > { %968 = vst [vmem:[%s1626_s13 + $0x78] sm:$0xff] %v952_v27 }
 0x206   : > { %1214 = shalt.err (!%p1211_p5)
}
 0x207   : > { %s1215_s30 = scalar_lea.hbm %s1672_s18, 2048  ;;  %s1219_s12 = scalar_lea.hbm %s1731_s6, 4096 }
 0x208   : > { %p1216_p6 = scmp.ne.s32.totalorder %s1672_s18, %s1215_s30  ;;  %p1220_p10 = scmp.lt.s32.totalorder %s1672_s18, %s1731_s6 }
 0x209   : > { %p1221_p11 = scmp.lt.s32.totalorder %s1219_s12, %s1215_s30 }
 0x20a   : > { %p1217_p7 = pnand %p1216_p6, %p1359_p4 }
 0x20b   : > { %p1222_p12 = por %p1221_p11, %p1220_p10 }
 0x20c   : > { %p1218_p9 = pneg %p1217_p7 }
 0x20e   : > { %p1223_p13 = pnand %p1222_p12, %p1218_p9 }
 0x210   : > { %1226 = shalt.err (!%p1223_p13)
}
 0x211   : > { %s1282_s16 = smov 256   ;;  %s1283_s17 = smov 16  }
 0x212   : > { %1140 = dma.vmem_to_hbm [thread:$0]  (%p1359_p4), %s1674_s15, 2048, %s1672_s18, %s1680_s24, %s1282_s16, %s1282_s16, %s1283_s17  }
 0x213 PF: > { %p1146_p0 = scmp.ge.s32.totalorder %s1277_s26, 2  ;;  %s1000_s19 = sand.u32 1, %s1257_s21  }
 0x214   : > { %s1001_s20 = scalar_lea.sflag [#allocation3], %s1000_s19 }
 0x215   : > { %p1143_p1 = pnand %p1146_p0, %p1366_p8 }
 0x217   : > { %p1144_p2 = pneg %p1143_p1 }
 0x219   : > { %1252 = dma.done.wait (%p1144_p2), %s1001_s20, 2048  }
 0x21a   : > { %1254 = vsyncadd (%p1144_p2), %s1001_s20, 4294965248  ;;  %s19_s26 = sadd.s32 1, %s1277_s26   ;;  %s1734_s21 = smov %s1261_s22 }
 0x21b   : > { %p16_p3 = scmp.ge.s32.totalorder %s19_s26, 4   ;;  %s1735_s22 = smov %s1265_s23 }
 0x21c   : > { %s1736_s23 = smov %s1372_s10  ;;  %s1737_s24 = smov %s1273_s25 }
 0x21d   : > { %s1738_s25 = smov %s1740_s29  ;;  %18 = sbr.rel (!%p16_p3) target bundleno = 4 (0x4), region = 82 }
 0x222   :  { %1006 = vsyncpa [#allocation3], 1 }
 0x223   :  { %1008 = vsyncpa [#allocation3 + $0x1], 1 }

</bundles_post_ra>
